<compile_context>
chip_gen: v7x
topology: tpu7x:2x2x1
jax: 0.10.0
libtpu: 0.0.40
codegen_flags: <defaults>
</compile_context>

<pallas_src>
import jax
import jax.numpy as jnp
from jax.experimental import pallas as pl
from jax.experimental.pallas import tpu as pltpu


def _duplicate_kernel(x_ref, o_ref):
    # x_ref: (tile_n, C), o_ref: (tile_n * r, C)
    tile_n, C = x_ref.shape
    r = o_ref.shape[0] // tile_n
    xv = x_ref[...]
    # Sublane replication: input row i -> output rows [i*r, (i+1)*r).
    # Broadcast + collapse is pure VPU/XLU work — free filler in a memory-bound
    # kernel — and the store to o_ref is a dense, unmasked (tile_n*r, C) write.
    o_ref[...] = jnp.broadcast_to(xv[:, None, :], (tile_n, r, C)).reshape(
        tile_n * r, C
    )


def _sublane_packing(dtype) -> int:
    # Rows packed per 32-bit sublane word: f32 -> 8, bf16 -> 16, int8/fp8 -> 32.
    itemsize = jnp.dtype(dtype).itemsize
    return max(8, 32 // max(1, itemsize))


def _pick_tile_n(N, C, r, dtype, vmem_budget_bytes, max_tile_rows):
    """Largest tile_n (multiple of the sublane packing) whose double-buffered
    input (tile_n, C) + output (tile_n*r, C) blocks fit the VMEM budget."""
    itemsize = jnp.dtype(dtype).itemsize
    base = _sublane_packing(dtype)
    bytes_per_row = C * itemsize * (1 + r)           # in-row + r out-rows
    fit = (vmem_budget_bytes // (2 * bytes_per_row)) // base * base
    n_ceil = ((N + base - 1) // base) * base          # never bigger than needed
    cap = max(base, (max_tile_rows // base) * base)
    return max(base, min(fit, cap, n_ceil))


def duplicate_points(
    x: jax.Array,
    r: int,
    *,
    max_tile_rows: int = 1024,
    vmem_budget_bytes: int = 20 * 1024 * 1024,
) -> jax.Array:
    """Pallas equivalent of DuplicatePoints(r).forward(x) with batch=None.

    x: [N, C]  ->  [N * r, C]
    """
    N, C = x.shape
    tile_n = _pick_tile_n(N, C, r, x.dtype, vmem_budget_bytes, max_tile_rows)
    grid = (pl.cdiv(N, tile_n),)

    return pl.pallas_call(
        _duplicate_kernel,
        out_shape=jax.ShapeDtypeStruct((N * r, C), x.dtype),
        grid=grid,
        in_specs=[pl.BlockSpec((tile_n, C), lambda i: (i, 0))],
        # 2-D, sublane-dense output block: tile_n*r rows per grid step, no
        # post-kernel reshape/relayout needed.
        out_specs=pl.BlockSpec((tile_n * r, C), lambda i: (i, 0)),
        compiler_params=pltpu.CompilerParams(
            # Independent row tiles -> shard across TensorCores (megacore/v7x).
            dimension_semantics=("parallel",),
            # Raise scoped VMEM above the 16/32 MiB defaults (v5e/v6e) while
            # staying well under v7x's 64 MiB physical VMEM.
            vmem_limit_bytes=48 * 1024 * 1024,
        ),
    )(x)


def duplicate_points_dense_batch(x_dense: jax.Array, r: int) -> jax.Array:
    """Batched (already-dense) path: x_dense [B, Nmax, C] -> [(B*Nmax*r), C].

    Equivalent to repeat(x, 'b n c -> b (n r) c') followed by
    rearrange('b n c -> (b n) c'), i.e. the unbatched kernel applied to the
    flattened [B*Nmax, C] view.
    """
    # TODO(synk): torch_geometric.to_dense_batch (ragged graph batching with a
    # `batch` index vector + padding mask) has no clean static-shape Pallas
    # equivalent; we assume the caller already provides the dense [B, Nmax, C].
    B, Nmax, C = x_dense.shape
    return duplicate_points(x_dense.reshape(B * Nmax, C), r)


if __name__ == "__main__":
    key0, key1 = jax.random.split(jax.random.PRNGKey(0))
    r, C = 4, 64

    # Small aligned case (matches the original example).
    N = 16
    x = jax.random.normal(key0, (N, C), dtype=jnp.float32)
    out = jax.block_until_ready(duplicate_points(x, r))
    ref = jnp.repeat(x, r, axis=0)
    assert out.shape == (N * r, C), out.shape
    assert jnp.array_equal(out, ref), "mismatch vs jnp.repeat reference (aligned)"

    # Ragged case: N not a multiple of the tile -> exercises the partial last
    # block path (cdiv grid, masked boundary DMA).
    N2 = 300
    x2 = jax.random.normal(key1, (N2, C), dtype=jnp.float32)
    out2 = jax.block_until_ready(duplicate_points(x2, r, max_tile_rows=128))
    ref2 = jnp.repeat(x2, r, axis=0)
    assert out2.shape == (N2 * r, C), out2.shape
    assert jnp.array_equal(out2, ref2), "mismatch vs jnp.repeat reference (ragged)"

    print("KERNEL_OK")
</pallas_src>

<mosaic_0001>
module attributes {stable_mosaic.version = 11 : i64} {
  func.func @_duplicate_kernel(%arg0: i32, %arg1: memref<16x64xf32, #tpu.memory_space<vmem>>, %arg2: memref<64x64xf32, #tpu.memory_space<vmem>>) attributes {dimension_semantics = [#tpu.dimension_semantics<parallel>], iteration_bounds = array<i64: 1>, scalar_prefetch = 0 : i64, scratch_operands = 0 : i64, tpu.core_type = #tpu.core_type<tc>, window_params = [{transform_indices = @transform_0, window_bounds = array<i64: 16, 64>}, {transform_indices = @transform_1, window_bounds = array<i64: 64, 64>}]} {
    %c0 = arith.constant 0 : index
    %c0_0 = arith.constant 0 : index
    %0 = vector.load %arg1[%c0, %c0_0] : memref<16x64xf32, #tpu.memory_space<vmem>>, vector<16x64xf32>
    %1 = vector.shape_cast %0 : vector<16x64xf32> to vector<16x1x64xf32>
    %2 = vector.shape_cast %1 : vector<16x1x64xf32> to vector<16x1x64xf32>
    %3 = vector.broadcast %2 : vector<16x1x64xf32> to vector<16x4x64xf32>
    %4 = vector.shape_cast %3 : vector<16x4x64xf32> to vector<64x64xf32>
    %c0_1 = arith.constant 0 : index
    %c0_2 = arith.constant 0 : index
    %5 = vector.load %arg2[%c0_1, %c0_2] : memref<64x64xf32, #tpu.memory_space<vmem>>, vector<64x64xf32>
    tpu.vector_store %arg2[%c0_1, %c0_2], %4 {strides = array<i32>} : memref<64x64xf32, #tpu.memory_space<vmem>>, vector<64x64xf32>,
    return
  }
  func.func @transform_0(%arg0: i32) -> (i32, i32) {
    %c0_i32 = arith.constant 0 : i32
    %c0_i32_0 = arith.constant 0 : i32
    return %arg0, %c0_i32 : i32, i32
  }
  func.func @transform_1(%arg0: i32) -> (i32, i32) {
    %c0_i32 = arith.constant 0 : i32
    %c0_i32_0 = arith.constant 0 : i32
    return %arg0, %c0_i32 : i32, i32
  }
}

</mosaic_0001>

<bundles_post_ra>
// kernel: tpu_custom_call.1
= control target key start
LH: loop header
LB: loop body
LE: loop exit
PB: predicated region body
PF: predicated region fallthrough
CT: control target
= control target key end

     0   :  { %6 = vsyncpa [#allocation3], 0  ;;  %s337_s0 = inlined_call_operand.hbm [shape: f32[16,64], index: 0, kind: input, shape index: {}]   ;;  %s338_s1 = inlined_call_operand.hbm [shape: f32[64,64], index: 1, kind: output, shape index: {}]  }
   0x1   :  { %7 = vsyncpa [#allocation4], 0  ;;  %s284_s6 = smov [#allocation2]   ;;  %s236_s10 = scalar_lea.hbm %s337_s0, 256 }
   0x2   :  { %s13_s7 = sshll.u32 %s284_s6, 4  ;;  %p237_p0 = scmp.ne.s32.totalorder %s337_s0, %s236_s10  ;;  %s14_s7 = int_to_ptr.vmem [resolvable:$true] %s13_s7 }
   0x3   :  { %p240_p1 = scmp.lt.u32.totalorder %s236_s10, %s337_s0 }
   0x5   :  { %p242_p2 = pnand %p240_p1, %p237_p0 }
   0x7   :  { %245 = shalt.err (!%p242_p2)
}
   0x8   :  { %s246_s15 = scalar_lea.vmem %s14_s7, 256  ;;  %p251_p4 = scmp.lt.s32.totalorder %s14_s7, %s14_s7 }
   0x9   :  { %p247_p3 = scmp.ne.s32.totalorder %s14_s7, %s246_s15  ;;  %p252_p5 = scmp.lt.s32.totalorder %s246_s15, %s246_s15 }
   0xb   :  { %p253_p6 = por %p252_p5, %p251_p4 }
   0xd   :  { %p254_p7 = pnand %p253_p6, %p247_p3 }
   0xf   :  { %257 = shalt.err (!%p254_p7)
}
  0x10   :  { %s285_s16 = smov 128   ;;  %s286_s17 = smov 8  }
  0x11   :  { %19 = dma.hbm_to_vmem [thread:$0]  %s337_s0, 256, %s14_s7, [#allocation3], %s285_s16, %s285_s16, %s286_s17  }
  0x12   :  { %280 = dma.done.wait [#allocation3], 256  }
  0x13   :  { %281 = vsyncadd [#allocation3], 4294967040  ;;  %v31_v0 = vlaneseq  ;;  %v287_v1 = vmov 1966171168   ;;  %v23_v6 = vld [vmem:[#allocation2] sm:$0xff]  ;;  %v24_v8 = vld [vmem:[#allocation2 + $0x8] sm:$0xff] }
  0x14   :  { %v29_v2 = vunpack.c.l.s4 %v287_v1  ;;  %v27_v10 = vcombine.high %v23_v6, %v23_v6  ;;  %v76_v12 = vcombine.high %v24_v8, %v24_v8  ;;  %vm205_vm0 = vcmask 523264   ;;  %s288_s0 = smov [#allocation5]  }
  0x15   :  { %v32_v3 = vshrl.u32 %v31_v0, 7  ;;  %s219_s20 = sshll.u32 %s288_s0, 4  ;;  %s220_s20 = int_to_ptr.vmem [resolvable:$true] %s219_s20 }
  0x16   :  { %v30_v4 = vunpack.c.0.s8 %v29_v2  ;;  %s258_s21 = scalar_lea.vmem %s220_s20, 1024  ;;  %p263_p9 = scmp.lt.s32.totalorder %s220_s20, %s220_s20 }
  0x17   :  { %v127_v7 = vsub.s32 0, %v32_v3  ;;  %p259_p8 = scmp.ne.s32.totalorder %s220_s20, %s258_s21  ;;  %p264_p10 = scmp.lt.s32.totalorder %s258_s21, %s258_s21 }
  0x18   :  { %v33_v5 = vsub.s32 %v30_v4, %v32_v3 }
  0x19   :  { %p265_p11 = por %p264_p10, %p263_p9 }
  0x1a   :  { %v34_v9 = vrot.slane %v23_v6, %v33_v5  ;;  %v83_v11 = vrot.slane %v24_v8, %v33_v5  ;;  %v41_v15 = vrot.slane %v27_v10, %v33_v5  ;;  %v90_v18 = vrot.slane %v76_v12, %v33_v5 }
  0x1b   :  { %p266_p12 = pnand %p265_p11, %p259_p8 }
  0x1c   :  { %v42_v13 = vcombine.high %v34_v9, %v34_v9  ;;  %v50_v14 = vrot.slane %v34_v9, %v33_v5  ;;  %v91_v16 = vcombine.high %v83_v11, %v83_v11  ;;  %v99_v17 = vrot.slane %v83_v11, %v33_v5 }
  0x1d   :  { %v43_v22 = vcombine.high %v41_v15, %v41_v15  ;;  %v57_v23 = vrot.slane %v41_v15, %v33_v5  ;;  %v92_v46 = vcombine.high %v90_v18, %v90_v18  ;;  %v106_v48 = vrot.slane %v90_v18, %v33_v5 }
  0x1e   :  { %v64_v19 = vrot.slane %v42_v13, %v33_v5  ;;  %v128_v20 = vrot.slane %v50_v14, %v127_v7  ;;  %v72_v21 = vcombine.high %v50_v14, %v50_v14  ;;  %v113_v24 = vrot.slane %v91_v16, %v33_v5 }
  0x1f   :  { %v160_v25 = vrot.slane %v99_v17, %v127_v7  ;;  %v121_v26 = vcombine.high %v99_v17, %v99_v17  ;;  %v71_v30 = vrot.slane %v43_v22, %v33_v5  ;;  %v144_v31 = vrot.slane %v57_v23, %v127_v7 }
  0x20   :  { %v132_v27 = vrot.slane %v64_v19, %v127_v7  ;;  %v74_v28 = vcombine.high %v64_v19, %v64_v19  ;;  %v136_v29 = vrot.slane %v72_v21, %v127_v7  ;;  %v73_v32 = vcombine.high %v57_v23, %v57_v23 }
  0x21   :  { %v164_v33 = vrot.slane %v113_v24, %v127_v7  ;;  %v123_v34 = vcombine.high %v113_v24, %v113_v24  ;;  %v148_v37 = vrot.slane %v71_v30, %v127_v7  ;;  %v75_v38 = vcombine.high %v71_v30, %v71_v30 }
  0x22   :  { %v189_v35 = vcombine.low %v128_v20, %v132_v27  ;;  %v140_v36 = vrot.slane %v74_v28, %v127_v7  ;;  %v152_v39 = vrot.slane %v73_v32, %v127_v7  ;;  %v168_v41 = vrot.slane %v121_v26, %v127_v7 }
  0x23   :  { %v193_v40 = vcombine.low %v160_v25, %v164_v33  ;;  %v172_v42 = vrot.slane %v123_v34, %v127_v7  ;;  %v191_v44 = vcombine.low %v144_v31, %v148_v37  ;;  %v156_v45 = vrot.slane %v75_v38, %v127_v7 }
  0x24   :  { %206 = vst.msk [vmem:[#allocation5] sm:$0xff] %vm205_vm0, %v189_v35  ;;  %v190_v43 = vcombine.low %v136_v29, %v140_v36  ;;  %v120_v50 = vrot.slane %v92_v46, %v33_v5  ;;  %v176_v51 = vrot.slane %v106_v48, %v127_v7  ;;  %v122_v52 = vcombine.high %v106_v48, %v106_v48 }
  0x25   :  { %210 = vst.msk [vmem:[#allocation5 + $0x20] sm:$0xff] %vm205_vm0, %v193_v40  ;;  %v194_v47 = vcombine.low %v168_v41, %v172_v42  ;;  %208 = vst.msk [vmem:[#allocation5 + $0x10] sm:$0xff] %vm205_vm0, %v191_v44  ;;  %v192_v49 = vcombine.low %v152_v39, %v156_v45 }
  0x26   :  { %207 = vst.msk [vmem:[#allocation5 + $0x8] sm:$0xff] %vm205_vm0, %v190_v43  ;;  %v180_v53 = vrot.slane %v120_v50, %v127_v7  ;;  %v124_v54 = vcombine.high %v120_v50, %v120_v50  ;;  %v184_v55 = vrot.slane %v122_v52, %v127_v7 }
  0x27   :  { %211 = vst.msk [vmem:[#allocation5 + $0x28] sm:$0xff] %vm205_vm0, %v194_v47  ;;  %209 = vst.msk [vmem:[#allocation5 + $0x18] sm:$0xff] %vm205_vm0, %v192_v49 }
  0x28   :  { %v195_v56 = vcombine.low %v176_v51, %v180_v53  ;;  %v188_v57 = vrot.slane %v124_v54, %v127_v7 }
  0x2a   :  { %212 = vst.msk [vmem:[#allocation5 + $0x30] sm:$0xff] %vm205_vm0, %v195_v56  ;;  %v196_v58 = vcombine.low %v184_v55, %v188_v57 }
  0x2c   :  { %213 = vst.msk [vmem:[#allocation5 + $0x38] sm:$0xff] %vm205_vm0, %v196_v58 }
  0x2d   :  { %269 = shalt.err (!%p266_p12)
}
  0x2e   :  { %s270_s24 = scalar_lea.hbm %s338_s1, 1024 }
  0x2f   :  { %p271_p13 = scmp.ne.s32.totalorder %s338_s1, %s270_s24  ;;  %p274_p0 = scmp.lt.u32.totalorder %s270_s24, %s338_s1 }
  0x31   :  { %p276_p1 = pnand %p274_p0, %p271_p13 }
  0x33   :  { %279 = shalt.err (!%p276_p1)
}
  0x34   :  { %225 = dma.vmem_to_hbm [thread:$0]  %s220_s20, 1024, %s338_s1, [#allocation4], %s285_s16, %s285_s16, %s286_s17  }
  0x35   :  { %282 = dma.done.wait [#allocation4], 1024  }
  0x36   :  { %283 = vsyncadd [#allocation4], 4294966272 }
  0x37   :  { %229 = vsyncpa [#allocation3], 1 }
  0x38   :  { %230 = vsyncpa [#allocation4], 1 }

</bundles_post_ra>
